<compile_context>
chip_gen: v7x
topology: tpu7x:2x2x1
jax: 0.10.0
libtpu: 0.0.40
codegen_flags: <defaults>
</compile_context>

<pallas_src>
import functools
import math

import numpy as np
import jax
import jax.numpy as jnp
from jax import lax
from jax.experimental import pallas as pl
from jax.experimental.pallas import tpu as pltpu


# Large finite negative value (avoids inf arithmetic; exp underflows to 0).
_MASK_VALUE = -0.7 * float(np.finfo(np.float32).max)


# ----------------------------------------------------------------------------
# Pallas kernel: one grid step processes G fused (batch*head) slices for one
# query tile, with the full key/value sequence resident in VMEM.
# ----------------------------------------------------------------------------
def _full_attention_kernel(q_ref, k_ref, v_ref, o_ref, *, scale, causal):
    # q_ref: (G, TL, E) bf16 ; k_ref: (G, E, S) bf16 ; v_ref: (G, S, D) bf16
    tl_q = q_ref.shape[1]

    # Fold scale/T into q (E-wide) instead of scaling the (G, TL, S) scores.
    q = (q_ref[...] * scale).astype(q_ref.dtype)

    # scores[g,l,s] = sum_e q[g,l,e] * kT[g,e,s] -> bf16 MXU, f32 accumulation.
    s = jnp.einsum('gle,ges->gls', q, k_ref[...],
                   preferred_element_type=jnp.float32)

    if causal:
        S = s.shape[2]
        q_off = pl.program_id(1) * tl_q               # global row of this tile
        row = lax.broadcasted_iota(jnp.int32, (tl_q, S), 0) + q_off
        col = lax.broadcasted_iota(jnp.int32, (tl_q, S), 1)
        s = jnp.where((col > row)[None, :, :], _MASK_VALUE, s)

    # Numerically-stable softmax along the key axis.  Normalization is applied
    # to the small (G, TL, D) output below, not to the (G, TL, S) weights.
    m = jnp.max(s, axis=-1, keepdims=True)            # (G, TL, 1)
    p = jnp.exp(s - m)                                 # (G, TL, S)
    denom = jnp.sum(p, axis=-1, keepdims=True)         # (G, TL, 1)

    # out[g,l,d] = sum_s p[g,l,s] * v[g,s,d] -> bf16 MXU, f32 accumulation.
    o = jnp.einsum('gls,gsd->gld', p.astype(jnp.bfloat16), v_ref[...],
                   preferred_element_type=jnp.float32)
    o = o * pl.reciprocal(denom, approx=True)          # EUP reciprocal (free slot)
    o_ref[...] = o.astype(o_ref.dtype)


# ----------------------------------------------------------------------------
# Block-size selection
# ----------------------------------------------------------------------------
def _choose_query_tile(L, max_tile=512):
    """Query-tile length: full L when small, otherwise the largest divisor of
    L that is a multiple of 8 and <= max_tile (>= 256 fills the v6e/v7x MXU)."""
    if L <= max_tile:
        return L
    best = None
    for t in range(8, max_tile + 1, 8):
        if L % t == 0:
            best = t
    return best if best is not None else L


def _block_vmem_bytes(g, tl, S, E, D, in_bytes, out_bytes):
    """Per-grid-step VMEM footprint: double-buffered in/out blocks plus the
    f32 score/weight temporaries (s, p, bf16 copy of p, f32 output acc)."""
    io = 2 * in_bytes * (tl * E + E * S + S * D) + 2 * out_bytes * tl * D
    tmp = (4 + 4 + 2) * tl * S + 4 * tl * D
    return g * (io + tmp)


def _choose_heads_per_block(bh, n_l_tiles, tl, S, E, D, in_bytes, out_bytes,
                            budget_bytes, min_total_steps=4):
    """Largest divisor of B*H whose per-step footprint fits the VMEM budget
    while keeping >= min_total_steps grid steps (>= 2 per TensorCore on v7x
    megacore so the HBM->VMEM DMAs stay double-buffered)."""
    need = min(min_total_steps, bh * n_l_tiles)
    best = None
    for g in range(1, bh + 1):
        if bh % g:
            continue
        if _block_vmem_bytes(g, tl, S, E, D, in_bytes, out_bytes) > budget_bytes:
            continue
        if (bh // g) * n_l_tiles < need:
            continue
        best = g
    if best is None:
        raise ValueError(
            "even a single-head block exceeds vmem_budget_bytes; lower "
            "query_tile or raise vmem_budget_bytes / vmem_limit_bytes")
    return best


# ----------------------------------------------------------------------------
# Wrapper
# ----------------------------------------------------------------------------
def full_attention(queries, keys, values, attn_mask=None, *,
                   mask_flag=True, scale=None, T=1.0,
                   activation='softmax', output_attention=False,
                   heads_per_block=None, query_tile=None,
                   vmem_budget_bytes=24 * 1024 * 1024,
                   vmem_limit_bytes=32 * 1024 * 1024):
    if activation != 'softmax':
        raise NotImplementedError(
            "only activation='softmax' is implemented")          # TODO(synk)
    if output_attention:
        raise NotImplementedError(
            "output_attention=True is not implemented")          # TODO(synk)
    if attn_mask is not None:
        raise NotImplementedError(
            "explicit attn_mask not implemented; causal mask is "
            "generated in-kernel when mask_flag=True")           # TODO(synk)

    B, L, H, E = queries.shape
    _, S, _, D = values.shape
    if mask_flag and L != S:
        raise ValueError("causal masking requires L == S (as in the reference)")

    out_dtype = queries.dtype
    # Fold 1/sqrt(E) (or user scale) and 1/T into one compile-time scalar.
    sc = (scale or 1.0 / math.sqrt(E)) / float(T)

    # bf16 operands for the MXU; also halves HBM traffic of the layout
    # transposes below and of the kernel's input DMAs (dominant lever on v5e).
    cdt = jnp.bfloat16
    qp = jnp.transpose(queries.astype(cdt), (0, 2, 1, 3)).reshape(B * H, L, E)
    # K pre-transposed to (B*H, E, S): lane-dense K block, plain NN matmul.
    kp = jnp.transpose(keys.astype(cdt), (0, 2, 3, 1)).reshape(B * H, E, S)
    vp = jnp.transpose(values.astype(cdt), (0, 2, 1, 3)).reshape(B * H, S, D)

    bh = B * H
    tl = query_tile if query_tile is not None else _choose_query_tile(L)
    if L % tl != 0 or (tl != L and tl % 8 != 0):
        raise ValueError(f"query_tile={tl} must divide L={L} and be a multiple of 8")
    n_lt = L // tl

    in_bytes = jnp.dtype(cdt).itemsize
    out_bytes = jnp.dtype(out_dtype).itemsize
    if heads_per_block is None:
        heads_per_block = _choose_heads_per_block(
            bh, n_lt, tl, S, E, D, in_bytes, out_bytes, vmem_budget_bytes)
    G = heads_per_block
    if bh % G != 0:
        raise ValueError(f"heads_per_block={G} must divide B*H={bh}")

    footprint = _block_vmem_bytes(G, tl, S, E, D, in_bytes, out_bytes)
    vmem_limit = max(int(vmem_limit_bytes), footprint + (2 << 20))

    kernel = functools.partial(_full_attention_kernel,
                               scale=sc, causal=bool(mask_flag))

    out_p = pl.pallas_call(
        kernel,
        out_shape=jax.ShapeDtypeStruct((bh, L, D), out_dtype),
        grid_spec=pltpu.PrefetchScalarGridSpec(
            num_scalar_prefetch=0,
            grid=(bh // G, n_lt),
            in_specs=[
                pl.BlockSpec((G, tl, E), lambda i, lt: (i, lt, 0)),
                # K/V block indices do not depend on lt -> no re-DMA across
                # consecutive query tiles of the same head group.
                pl.BlockSpec((G, E, S), lambda i, lt: (i, 0, 0)),
                pl.BlockSpec((G, S, D), lambda i, lt: (i, 0, 0)),
            ],
            out_specs=pl.BlockSpec((G, tl, D), lambda i, lt: (i, lt, 0)),
        ),
        compiler_params=pltpu.CompilerParams(
            dimension_semantics=("parallel", "parallel"),
            vmem_limit_bytes=vmem_limit),
    )(qp, kp, vp)

    out = jnp.transpose(out_p.reshape(B, H, L, D), (0, 2, 1, 3))  # (B, L, H, D)
    return out, None


# ----------------------------------------------------------------------------
# Pure-numpy reference (independent of the kernel) for correctness checking.
# ----------------------------------------------------------------------------
def _reference_numpy(q, k, v, *, scale=None, T=1.0, causal=True):
    q = np.asarray(q, np.float64)
    k = np.asarray(k, np.float64)
    v = np.asarray(v, np.float64)
    B, L, H, E = q.shape
    S = k.shape[1]
    sc = scale if scale is not None else 1.0 / math.sqrt(E)

    scores = np.einsum('blhe,bshe->bhls', q, k) * sc
    if causal:
        mask = np.triu(np.ones((L, S), dtype=bool), k=1)
        scores = np.where(mask[None, None], -np.inf, scores)
    scores = scores / float(T)
    m = scores.max(axis=-1, keepdims=True)
    p = np.exp(scores - m)
    A = p / p.sum(axis=-1, keepdims=True)
    V = np.einsum('bhls,bshd->blhd', A, v)
    return V.astype(np.float32)


if __name__ == "__main__":
    B, L, S, H, E, D = 2, 128, 128, 4, 64, 64

    key = jax.random.PRNGKey(0)
    kq, kk, kv = jax.random.split(key, 3)
    q = jax.random.normal(kq, (B, L, H, E), dtype=jnp.float32)
    k = jax.random.normal(kk, (B, S, H, E), dtype=jnp.float32)
    v = jax.random.normal(kv, (B, S, H, D), dtype=jnp.float32)

    # Reference is fed the same bf16-rounded operands the kernel consumes, so
    # the comparison isolates in-kernel error (accumulation, approx recip).
    qr = np.asarray(q.astype(jnp.bfloat16).astype(jnp.float32))
    kr = np.asarray(k.astype(jnp.bfloat16).astype(jnp.float32))
    vr = np.asarray(v.astype(jnp.bfloat16).astype(jnp.float32))

    # Causal (default module configuration: mask_flag=True, softmax, T=1).
    out, attn = full_attention(q, k, v, None, mask_flag=True)
    out = jax.block_until_ready(out)
    assert attn is None
    assert out.shape == (B, L, H, D)
    ref = _reference_numpy(qr, kr, vr, causal=True)
    np.testing.assert_allclose(np.asarray(out), ref, rtol=2e-2, atol=1e-2)

    # Non-causal path (mask_flag=False).
    out_nc, _ = full_attention(q, k, v, None, mask_flag=False)
    out_nc = jax.block_until_ready(out_nc)
    ref_nc = _reference_numpy(qr, kr, vr, causal=False)
    np.testing.assert_allclose(np.asarray(out_nc), ref_nc, rtol=2e-2, atol=1e-2)

    # Exercise the query-tile grid axis (tiled causal-mask offset path).
    out_t, _ = full_attention(q, k, v, None, mask_flag=True, query_tile=64)
    out_t = jax.block_until_ready(out_t)
    np.testing.assert_allclose(np.asarray(out_t), ref, rtol=2e-2, atol=1e-2)

    print("KERNEL_OK")
</pallas_src>

<mosaic_0001>
module attributes {stable_mosaic.version = 11 : i64} {
  func.func @_full_attention_kernel(%arg0: i32, %arg1: i32, %arg2: memref<2x128x64xbf16, #tpu.memory_space<vmem>>, %arg3: memref<2x64x128xbf16, #tpu.memory_space<vmem>>, %arg4: memref<2x128x64xbf16, #tpu.memory_space<vmem>>, %arg5: memref<2x128x64xf32, #tpu.memory_space<vmem>>) attributes {dimension_semantics = [#tpu.dimension_semantics<parallel>, #tpu.dimension_semantics<parallel>], iteration_bounds = array<i64: 4, 1>, scalar_prefetch = 0 : i64, scratch_operands = 0 : i64, tpu.core_type = #tpu.core_type<tc>, window_params = [{transform_indices = @transform_0, window_bounds = array<i64: 2, 128, 64>}, {transform_indices = @transform_1, window_bounds = array<i64: 2, 64, 128>}, {transform_indices = @transform_2, window_bounds = array<i64: 2, 128, 64>}, {transform_indices = @transform_3, window_bounds = array<i64: 2, 128, 64>}]} {
    %c0 = arith.constant 0 : index
    %c0_0 = arith.constant 0 : index
    %c0_1 = arith.constant 0 : index
    %0 = vector.load %arg2[%c0, %c0_0, %c0_1] : memref<2x128x64xbf16, #tpu.memory_space<vmem>>, vector<2x128x64xbf16>
    %cst = arith.constant 1.250000e-01 : bf16
    %1 = vector.broadcast %cst : bf16 to vector<2x128x64xbf16>
    %2 = arith.mulf %0, %1 : vector<2x128x64xbf16>
    %c0_2 = arith.constant 0 : index
    %c0_3 = arith.constant 0 : index
    %c0_4 = arith.constant 0 : index
    %3 = vector.load %arg3[%c0_2, %c0_3, %c0_4] : memref<2x64x128xbf16, #tpu.memory_space<vmem>>, vector<2x64x128xbf16>
    "tpu.trace_start"() <{level = 10 : i32, message = "gle,ges->gls"}> : () -> ()
    %cst_5 = arith.constant dense<0.000000e+00> : vector<2x128x128xf32>
    %4 = tpu.matmul %2, %3, %cst_5 {dimension_numbers = #tpu.dot_dimension_numbers<[2], [1], [1], [2], [0, 0, 0, 1, 1, 2], [0], [0]>} : vector<2x128x64xbf16>, vector<2x64x128xbf16>, vector<2x128x128xf32> -> vector<2x128x128xf32>
    "tpu.trace_stop"() : () -> ()
    %c128_i32 = arith.constant 128 : i32
    %5 = arith.muli %arg1, %c128_i32 : i32
    %6 = tpu.iota {dimensions = array<i32: 0>} : vector<128x128xi32>
    %7 = vector.broadcast %5 : i32 to vector<128x128xi32>
    %8 = arith.addi %6, %7 : vector<128x128xi32>
    %9 = tpu.iota {dimensions = array<i32: 1>} : vector<128x128xi32>
    %10 = arith.cmpi sgt, %9, %8 : vector<128x128xi32>
    %11 = vector.shape_cast %10 : vector<128x128xi1> to vector<1x128x128xi1>
    %cst_6 = arith.constant -2.38197633E+38 : f32
    %12 = vector.shape_cast %11 : vector<1x128x128xi1> to vector<1x128x128xi1>
    %13 = vector.broadcast %12 : vector<1x128x128xi1> to vector<2x128x128xi1>
    %14 = vector.broadcast %cst_6 : f32 to vector<2x128x128xf32>
    %15 = arith.select %13, %14, %4 : vector<2x128x128xi1>, vector<2x128x128xf32>
    %cst_7 = arith.constant dense<0xFF800000> : vector<2x128xf32>
    %16 = vector.multi_reduction <maximumf>, %15, %cst_7 [2] : vector<2x128x128xf32> to vector<2x128xf32>
    %17 = vector.shape_cast %16 : vector<2x128xf32> to vector<2x128x1xf32>
    %18 = vector.broadcast %17 : vector<2x128x1xf32> to vector<2x128x128xf32>
    %19 = arith.subf %15, %18 : vector<2x128x128xf32>
    %20 = math.exp %19 : vector<2x128x128xf32>
    %cst_8 = arith.constant dense<0.000000e+00> : vector<2x128xf32>
    %21 = vector.multi_reduction <add>, %20, %cst_8 [2] : vector<2x128x128xf32> to vector<2x128xf32>
    %22 = vector.shape_cast %21 : vector<2x128xf32> to vector<2x128x1xf32>
    %23 = arith.truncf %20 : vector<2x128x128xf32> to vector<2x128x128xbf16>
    %c0_9 = arith.constant 0 : index
    %c0_10 = arith.constant 0 : index
    %c0_11 = arith.constant 0 : index
    %24 = vector.load %arg4[%c0_9, %c0_10, %c0_11] : memref<2x128x64xbf16, #tpu.memory_space<vmem>>, vector<2x128x64xbf16>
    "tpu.trace_start"() <{level = 10 : i32, message = "gls,gsd->gld"}> : () -> ()
    %cst_12 = arith.constant dense<0.000000e+00> : vector<2x128x64xf32>
    %25 = tpu.matmul %23, %24, %cst_12 {dimension_numbers = #tpu.dot_dimension_numbers<[2], [1], [1], [2], [0, 0, 0, 1, 1, 2], [0], [0]>} : vector<2x128x128xbf16>, vector<2x128x64xbf16>, vector<2x128x64xf32> -> vector<2x128x64xf32>
    "tpu.trace_stop"() : () -> ()
    %26 = tpu.reciprocal %22 {approx = true} : vector<2x128x1xf32> -> vector<2x128x1xf32>
    %27 = vector.broadcast %26 : vector<2x128x1xf32> to vector<2x128x64xf32>
    %28 = arith.mulf %25, %27 : vector<2x128x64xf32>
    %c0_13 = arith.constant 0 : index
    %c0_14 = arith.constant 0 : index
    %c0_15 = arith.constant 0 : index
    %29 = vector.load %arg5[%c0_13, %c0_14, %c0_15] : memref<2x128x64xf32, #tpu.memory_space<vmem>>, vector<2x128x64xf32>
    tpu.vector_store %arg5[%c0_13, %c0_14, %c0_15], %28 {strides = array<i32>} : memref<2x128x64xf32, #tpu.memory_space<vmem>>, vector<2x128x64xf32>,
    return
  }
  func.func @transform_0(%arg0: i32, %arg1: i32) -> (i32, i32, i32) {
    %c0_i32 = arith.constant 0 : i32
    %c0_i32_0 = arith.constant 0 : i32
    return %arg0, %arg1, %c0_i32 : i32, i32, i32
  }
  func.func @transform_1(%arg0: i32, %arg1: i32) -> (i32, i32, i32) {
    %c0_i32 = arith.constant 0 : i32
    %c0_i32_0 = arith.constant 0 : i32
    %c0_i32_1 = arith.constant 0 : i32
    return %arg0, %c0_i32, %c0_i32_0 : i32, i32, i32
  }
  func.func @transform_2(%arg0: i32, %arg1: i32) -> (i32, i32, i32) {
    %c0_i32 = arith.constant 0 : i32
    %c0_i32_0 = arith.constant 0 : i32
    %c0_i32_1 = arith.constant 0 : i32
    return %arg0, %c0_i32, %c0_i32_0 : i32, i32, i32
  }
  func.func @transform_3(%arg0: i32, %arg1: i32) -> (i32, i32, i32) {
    %c0_i32 = arith.constant 0 : i32
    %c0_i32_0 = arith.constant 0 : i32
    return %arg0, %arg1, %c0_i32 : i32, i32, i32
  }
}

</mosaic_0001>

<bundles_post_ra>
// kernel: tpu_custom_call.1
= control target key start
LH: loop header
LB: loop body
LE: loop exit
PB: predicated region body
PF: predicated region fallthrough
CT: control target
= control target key end

     0   :  { %s2077_s12 = smov 0   ;;  %s2079_s13 = smov 0   ;;  %s2520_s0 = inlined_call_operand.vmem [shape: bf16[8,128,64], index: 0, kind: input, shape index: {}]   ;;  %s2521_s1 = inlined_call_operand.vmem [shape: bf16[8,64,128], index: 1, kind: input, shape index: {}]   ;;  %s2522_s2 = inlined_call_operand.vmem [shape: bf16[8,128,64], index: 2, kind: input, shape index: {}]   ;;  %s2523_s3 = inlined_call_operand.vmem [shape: f32[8,128,64], index: 3, kind: output, shape index: {}]  }
   0x1   :  { %s2081_s14 = smov 0  }
   0x2 LB: > { %s25_s15 = sadd.s32 1, %s2051_s13  ;;  %p1614_p0 = scmp.ge.s32.totalorder %s2055_s14, 1  ;;  %s2055_s14 = sphi %s2081_s14, %s13_s14   ;;  %s2051_s13 = sphi %s2079_s13, %s2525_s13   ;;  %s2047_s12 = sphi %s2077_s12, %s2524_s12  }
   0x3   : > { %p27_p1 = scmp.ge.s32.totalorder %s25_s15, 4  ;;  %p184_p2 = scmp.lt.s32.totalorder %s2055_s14, 5 }
   0x5   : > { %s2527_s15 = smov (%p27_p1, %s25_s15), 0  ;;  %p185_p3 = pnand %p1614_p0, %p184_p2 }
   0x6   : > { %s1615_s16 = sshll.u32 (!%p185_p3), %s2047_s12, 1  ;;  %vm414_vm0 = vcmask (!%p185_p3), 523264  }
   0x7   : > { %188 = sbr.rel (%p185_p3) target bundleno = 685 (0x2ad), region = 32  ;;  %p232_p4 = scmp.lt.s32.totalorder (!%p185_p3), %s1615_s16, 7 }
   0xe   : > { %s2529_s16 = smov (!%p232_p4, %s1615_s16), 7 }
   0xf   : > { %s1686_s17 = sshll.u32 %s2529_s16, 5  ;;  %s1685_s21 = sshll.u32 %s2529_s16, 6 }
  0x10   : > { %s247_s20 = scalar_lea.vmem %s2521_s1, %s1686_s17  ;;  %s2107_s24 = scalar_lea.vmem %s2520_s0, %s1685_s21 }
  0x11   : > { %v1881_v0 = vld [vmem:[%s247_s20] sm:$0xff]   ;;  %v1883_v2 = vld [vmem:[%s247_s20 + $0x8] sm:$0xff]   ;;  %v1885_v4 = vld [vmem:[%s247_s20 + $0x10] sm:$0xff]   ;;  %s2154_s27 = scalar_lea.vmem %s2522_s2, %s1685_s21  ;;  %s1688_s28 = sshll.u32 %s2529_s16, 7 }
  0x12   : > { %v1882_v1 = vld [vmem:[%s247_s20 + $0x20] sm:$0xff]   ;;  %1745 = vmatprep.subr.bf16.mxu0 %v1881_v0  ;;  %v1884_v3 = vld [vmem:[%s247_s20 + $0x28] sm:$0xff]   ;;  %v1886_v5 = vld [vmem:[%s247_s20 + $0x30] sm:$0xff]   ;;  %s2441_s4 = scalar_lea.vmem %s2523_s3, %s1688_s28 }
  0x13   : > { %1769 = vmatprep.subr.bf16.mxu1 %v1882_v1  ;;  %1746 = vmatpush3.bf16.msra.mxu0 %v1881_v0  ;;  %v1887_v6 = vld [vmem:[%s247_s20 + $0x18] sm:$0xff]   ;;  %v270_v8 = vld [vmem:[%s2107_s24] sm:$0xf]  ;;  %v271_v9 = vld [vmem:[%s2107_s24 + $0x4] sm:$0xf] }
  0x14   : > { %1770 = vmatpush3.bf16.msra.mxu1 %v1882_v1  ;;  %1747 = vmatprep.subr.bf16.mxu0 %v1883_v2  ;;  %v1888_v7 = vld [vmem:[%s247_s20 + $0x38] sm:$0xff]   ;;  %v286_v10 = vld [vmem:[%s2107_s24 + $0x40] sm:$0xf]  ;;  %v302_v11 = vmul.bf16 1040203264, %v270_v8 }
  0x15   : > { %1771 = vmatprep.subr.bf16.mxu1 %v1884_v3  ;;  %v303_v12 = vmul.bf16 1040203264, %v271_v9  ;;  %v287_v13 = vld [vmem:[%s2107_s24 + $0x44] sm:$0xf]  ;;  %v318_v14 = vmul.bf16 1040203264, %v286_v10 }
  0x16   : > { %v319_v15 = vmul.bf16 1040203264, %v287_v13  ;;  %v272_v16 = vld [vmem:[%s2107_s24 + $0x8] sm:$0xf]  ;;  %v273_v18 = vld [vmem:[%s2107_s24 + $0xc] sm:$0xf] }
  0x17   : > { %1748 = vmatpush3.bf16.msra.mxu0 %v1883_v2  ;;  %v1627_v17 = vcombine.low %v302_v11, %v303_v12  ;;  %v304_v19 = vmul.bf16 1040203264, %v272_v16  ;;  %v288_v20 = vld [vmem:[%s2107_s24 + $0x48] sm:$0xf]  ;;  %v305_v22 = vmul.bf16 1040203264, %v273_v18 }
  0x18   : > { %1772 = vmatpush3.bf16.msra.mxu1 %v1884_v3  ;;  %1749 = vmatprep.subr.bf16.mxu0 %v1885_v4  ;;  %v1647_v21 = vcombine.low %v318_v14, %v319_v15  ;;  %v289_v23 = vld [vmem:[%s2107_s24 + $0x4c] sm:$0xf]  ;;  %v320_v24 = vmul.bf16 1040203264, %v288_v20  ;;  %v274_v26 = vld [vmem:[%s2107_s24 + $0x10] sm:$0xf] }
  0x19   : > { %1773 = vmatprep.subr.bf16.mxu1 %v1886_v5  ;;  %1753 = vmatprep.mubr.msk.bf16.mxu0 %vm414_vm0, %v1627_v17  ;;  %v321_v25 = vmul.bf16 1040203264, %v289_v23  ;;  %v275_v27 = vld [vmem:[%s2107_s24 + $0x14] sm:$0xf]  ;;  %v1628_v28 = vcombine.low %v304_v19, %v305_v22  ;;  %v306_v29 = vmul.bf16 1040203264, %v274_v26  ;;  %v722_v26 = vlaneseq }
  0x1a   : > { %1777 = vmatprep.mubr.msk.bf16.mxu1 %vm414_vm0, %v1647_v21  ;;  %v307_v30 = vmul.bf16 1040203264, %v275_v27  ;;  %v276_v31 = vld [vmem:[%s2107_s24 + $0x18] sm:$0xf]  ;;  %v277_v33 = vld [vmem:[%s2107_s24 + $0x1c] sm:$0xf] }
  0x1b   : > { %1750 = vmatpush3.bf16.msra.mxu0 %v1885_v4  ;;  %v1648_v32 = vcombine.low %v320_v24, %v321_v25  ;;  %v308_v34 = vmul.bf16 1040203264, %v276_v31  ;;  %v290_v35 = vld [vmem:[%s2107_s24 + $0x50] sm:$0xf]  ;;  %v309_v37 = vmul.bf16 1040203264, %v277_v33 }
  0x1c   : > { %1774 = vmatpush3.bf16.msra.mxu1 %v1886_v5  ;;  %1751 = vmatprep.subr.bf16.mxu0 %v1887_v6  ;;  %v1629_v36 = vcombine.low %v306_v29, %v307_v30  ;;  %v291_v38 = vld [vmem:[%s2107_s24 + $0x54] sm:$0xf]  ;;  %v322_v39 = vmul.bf16 1040203264, %v290_v35  ;;  %v292_v41 = vld [vmem:[%s2107_s24 + $0x58] sm:$0xf] }
  0x1d   : > { %1775 = vmatprep.subr.bf16.mxu1 %v1888_v7  ;;  %v323_v40 = vmul.bf16 1040203264, %v291_v38  ;;  %v293_v42 = vld [vmem:[%s2107_s24 + $0x5c] sm:$0xf]  ;;  %v324_v43 = vmul.bf16 1040203264, %v292_v41  ;;  %v1630_v56 = vcombine.low %v308_v34, %v309_v37 }
  0x1e   : > { %v325_v44 = vmul.bf16 1040203264, %v293_v42  ;;  %v278_v45 = vld [vmem:[%s2107_s24 + $0x20] sm:$0xf]  ;;  %v279_v47 = vld [vmem:[%s2107_s24 + $0x24] sm:$0xf] }
  0x1f   : > { %1752 = vmatpush3.bf16.msra.mxu0 %v1887_v6  ;;  %v1649_v46 = vcombine.low %v322_v39, %v323_v40  ;;  %v310_v48 = vmul.bf16 1040203264, %v278_v45  ;;  %v280_v49 = vld [vmem:[%s2107_s24 + $0x28] sm:$0xf]  ;;  %v311_v50 = vmul.bf16 1040203264, %v279_v47 }
  0x20   : > { %1776 = vmatpush3.bf16.msra.mxu1 %v1888_v7  ;;  %v281_v51 = vld [vmem:[%s2107_s24 + $0x2c] sm:$0xf]  ;;  %v312_v52 = vmul.bf16 1040203264, %v280_v49  ;;  %v294_v54 = vld [vmem:[%s2107_s24 + $0x60] sm:$0xf]  ;;  %v1650_v60 = vcombine.low %v324_v43, %v325_v44 }
  0x21   : > { %v313_v53 = vmul.bf16 1040203264, %v281_v51  ;;  %v295_v55 = vld [vmem:[%s2107_s24 + $0x64] sm:$0xf]  ;;  %v326_v57 = vmul.bf16 1040203264, %v294_v54  ;;  %v1631_v61 = vcombine.low %v310_v48, %v311_v50 }
  0x22   : > { %1754 = vmatmul.mubr.msk.bf16.vlgmr.msra.gmra.mrb[0].mxu0 %vm414_vm0, %v1628_v28  ;;  %v327_v58 = vmul.bf16 1040203264, %v295_v55  ;;  %v296_v59 = vld [vmem:[%s2107_s24 + $0x68] sm:$0xf]  ;;  %v297_v62 = vld [vmem:[%s2107_s24 + $0x6c] sm:$0xf] }
  0x23   : > { %1778 = vmatmul.mubr.msk.bf16.vlgmr.msra.gmra.mrb[0].mxu1 %vm414_vm0, %v1648_v32  ;;  %1757 = vmatprep.mubr.msk.bf16.mxu0 %vm414_vm0, %v1629_v36  ;;  %v328_v63 = vmul.bf16 1040203264, %v296_v59  ;;  %v282_v0 = vld [vmem:[%s2107_s24 + $0x30] sm:$0xf]  ;;  %v329_v2 = vmul.bf16 1040203264, %v297_v62  ;;  %v1632_v18 = vcombine.low %v312_v52, %v313_v53 }
  0x24   : > { %1781 = vmatprep.mubr.msk.bf16.mxu1 %vm414_vm0, %v1649_v46  ;;  %v1651_v1 = vcombine.low %v326_v57, %v327_v58  ;;  %v283_v3 = vld [vmem:[%s2107_s24 + $0x34] sm:$0xf]  ;;  %v314_v4 = vmul.bf16 1040203264, %v282_v0  ;;  %v284_v6 = vld [vmem:[%s2107_s24 + $0x38] sm:$0xf] }
  0x25   : > { %v315_v5 = vmul.bf16 1040203264, %v283_v3  ;;  %v285_v7 = vld [vmem:[%s2107_s24 + $0x3c] sm:$0xf]  ;;  %v316_v8 = vmul.bf16 1040203264, %v284_v6  ;;  %v1652_v19 = vcombine.low %v328_v63, %v329_v2 }
  0x26   : > { %v317_v9 = vmul.bf16 1040203264, %v285_v7  ;;  %v298_v10 = vld [vmem:[%s2107_s24 + $0x70] sm:$0xf]  ;;  %v299_v11 = vld [vmem:[%s2107_s24 + $0x74] sm:$0xf] }
  0x27   : > { %v330_v12 = vmul.bf16 1040203264, %v298_v10  ;;  %v300_v13 = vld [vmem:[%s2107_s24 + $0x78] sm:$0xf]  ;;  %v331_v14 = vmul.bf16 1040203264, %v299_v11  ;;  %v1633_v20 = vcombine.low %v314_v4, %v315_v5 }
  0x28   : > { %v301_v15 = vld [vmem:[%s2107_s24 + $0x7c] sm:$0xf]  ;;  %v332_v16 = vmul.bf16 1040203264, %v300_v13  ;;  %v1634_v22 = vcombine.low %v316_v8, %v317_v9  ;;  %v1889_v24 = vld [vmem:[%s2154_s27] sm:$0xff]   ;;  %v2166_v27 = vshrl.u32 %v722_v26, 7 }
  0x29   : > { %v333_v17 = vmul.bf16 1040203264, %v301_v15  ;;  %v1653_v21 = vcombine.low %v330_v12, %v331_v14  ;;  %v1890_v25 = vld [vmem:[%s2154_s27 + $0x40] sm:$0xff]   ;;  %1793 = vmatprep.subr.bf16.mxu0 %v1889_v24  ;;  %v2169_v29 = vand.u32 127, %v722_v26  ;;  %v1891_v62 = vld [vmem:[%s2154_s27 + $0x8] sm:$0xff]   ;;  %v1893_v9 = vld [vmem:[%s2154_s27 + $0x10] sm:$0xff]  }
  0x2a   : > { %1758 = vmatmul.mubr.msk.bf16.gmra.mrb[4].mxu0 %vm414_vm0, %v1630_v56  ;;  %1825 = vmatprep.subr.bf16.mxu1 %v1890_v25  ;;  %v725_v28 = vadd.s32 16, %v2166_v27  ;;  %v726_v30 = vadd.s32 24, %v2166_v27  ;;  %v724_v43 = vadd.s32 8, %v2166_v27  ;;  %v730_v51 = vadd.s32 56, %v2166_v27  ;;  %v1892_v63 = vld [vmem:[%s2154_s27 + $0x48] sm:$0xff]   ;;  %v1894_v10 = vld [vmem:[%s2154_s27 + $0x50] sm:$0xff]  }
  0x2b   : > { %1782 = vmatmul.mubr.msk.bf16.gmra.mrb[4].mxu1 %vm414_vm0, %v1650_v60  ;;  %1761 = vmatprep.mubr.msk.bf16.mxu0 %vm414_vm0, %v1631_v61  ;;  %v1654_v23 = vcombine.low %v332_v16, %v333_v17  ;;  %vm758_vm3 = vcmp.gt.s32.totalorder %v2169_v29, %v2166_v27  ;;  %v729_v54 = vadd.s32 48, %v2166_v27  ;;  %v727_v4 = vadd.s32 32, %v2166_v27  ;;  %v1895_v16 = vld [vmem:[%s2154_s27 + $0x18] sm:$0xff]  }
  0x2c   : > { %1785 = vmatprep.mubr.msk.bf16.mxu1 %vm414_vm0, %v1651_v1  ;;  %1826 = vmatpush3.bf16.msra.mxu1 %v1890_v25  ;;  %vm760_vm1 = vcmp.gt.s32.totalorder %v2169_v29, %v725_v28  ;;  %vm761_vm2 = vcmp.gt.s32.totalorder %v2169_v29, %v726_v30  ;;  %vm759_vm4 = vcmp.gt.s32.totalorder %v2169_v29, %v724_v43  ;;  %v728_v1 = vadd.s32 40, %v2166_v27  ;;  %v1896_v17 = vld [vmem:[%s2154_s27 + $0x58] sm:$0xff]   ;;  %v1897_v28 = vld [vmem:[%s2154_s27 + $0x20] sm:$0xff]   ;;  %v1901_v43 = vld [vmem:[%s2154_s27 + $0x30] sm:$0xff]  }
  0x2d   : > { %1794 = vmatpush3.bf16.msra.mxu0 %v1889_v24  ;;  %vm765_vm5 = vcmp.gt.s32.totalorder %v2169_v29, %v730_v51  ;;  %vm764_vm6 = vcmp.gt.s32.totalorder %v2169_v29, %v729_v54  ;;  %1827 = vmatprep.subr.bf16.mxu1 %v1892_v63  ;;  %vm762_vm8 = vcmp.gt.s32.totalorder %v2169_v29, %v727_v4  ;;  %v1898_v30 = vld [vmem:[%s2154_s27 + $0x60] sm:$0xff]  }
  0x2e   : > { %1795 = vmatprep.subr.bf16.mxu0 %v1891_v62  ;;  %vm763_vm7 = vcmp.gt.s32.totalorder %v2169_v29, %v728_v1 }
  0x30   : > { %1828 = vmatpush3.bf16.msra.mxu1 %v1892_v63 }
  0x31   : > { %1796 = vmatpush3.bf16.msra.mxu0 %v1891_v62  ;;  %1829 = vmatprep.subr.bf16.mxu1 %v1894_v10 }
  0x32   : > { %1762 = vmatmul.mubr.msk.bf16.gmra.mrb[8].mxu0 %vm414_vm0, %v1632_v18  ;;  %1797 = vmatprep.subr.bf16.mxu0 %v1893_v9 }
  0x33   : > { %1786 = vmatmul.mubr.msk.bf16.gmra.mrb[8].mxu1 %vm414_vm0, %v1652_v19  ;;  %1765 = vmatprep.mubr.msk.bf16.mxu0 %vm414_vm0, %v1633_v20  ;;  %v734_v19 = vadd.s32 88, %v2166_v27 }
  0x34   : > { %1789 = vmatprep.mubr.msk.bf16.mxu1 %vm414_vm0, %v1653_v21  ;;  %1830 = vmatpush3.bf16.msra.mxu1 %v1894_v10 }
  0x35   : > { %1798 = vmatpush3.bf16.msra.mxu0 %v1893_v9  ;;  %1831 = vmatprep.subr.bf16.mxu1 %v1896_v17  ;;  %vm769_vm9 = vcmp.gt.s32.totalorder %v2169_v29, %v734_v19 }
  0x36   : > { %1799 = vmatprep.subr.bf16.mxu0 %v1895_v16 }
  0x38   : > { %1832 = vmatpush3.bf16.msra.mxu1 %v1896_v17 }
  0x39   : > { %1800 = vmatpush3.bf16.msra.mxu0 %v1895_v16  ;;  %1833 = vmatprep.subr.bf16.mxu1 %v1898_v30 }
  0x3a   : > { %1766 = vmatmul.mubr.msk.bf16.gmra.mrb[12].mxu0 %vm414_vm0, %v1634_v22  ;;  %v733_v22 = vadd.s32 80, %v2166_v27  ;;  %1801 = vmatprep.subr.bf16.mxu0 %v1897_v28 }
  0x3b   : > { %1790 = vmatmul.mubr.msk.bf16.gmra.mrb[12].mxu1 %vm414_vm0, %v1654_v23 }
  0x3c   : > { %vm768_vm10 = vcmp.gt.s32.totalorder %v2169_v29, %v733_v22  ;;  %1834 = vmatpush3.bf16.msra.mxu1 %v1898_v30 }
  0x3d   : > { %1802 = vmatpush3.bf16.msra.mxu0 %v1897_v28 }
  0xf5   : > { %v1755_v31 = vpop.f32.mrb[0].mxu0 }
  0xf6   : > { %v1779_v32 = vpop.f32.mrb[0].mxu1  ;;  %v473_v33 = vpop.f32.mrb[1].mxu0  ;;  %v2173_v34 = vsel %vm760_vm1, -2.3819763e+38, %v1755_v31 }
  0xf7   : > { %v658_v35 = vpop.f32.mrb[1].mxu1  ;;  %v2175_v36 = vsel %vm760_vm1, -2.3819763e+38, %v1779_v32  ;;  %842 = vmax.xlane.f32.xlu1 %v2173_v34  ;;  %v1756_v37 = vpop.f32.mrb[2].mxu0  ;;  %v2184_v42 = vsel %vm758_vm3, -2.3819763e+38, %v473_v33 }
  0xf8   : > { %874 = vmax.xlane.f32.xlu0 %v2175_v36  ;;  %v1780_v38 = vpop.f32.mrb[2].mxu1  ;;  %v476_v39 = vpop.f32.mrb[3].mxu0  ;;  %v2182_v41 = vsel %vm761_vm2, -2.3819763e+38, %v1756_v37  ;;  %v2191_v48 = vsel %vm758_vm3, -2.3819763e+38, %v658_v35 }
  0xf9   : > { %v661_v40 = vpop.f32.mrb[3].mxu1  ;;  %v2189_v45 = vsel %vm761_vm2, -2.3819763e+38, %v1780_v38  ;;  %v2203_v57 = vsel %vm759_vm4, -2.3819763e+38, %v476_v39  ;;  %v1899_v33 = vld [vmem:[%s2154_s27 + $0x28] sm:$0xff]  }
  0xfa   : > { %v2200_v56 = vsel %vm759_vm4, -2.3819763e+38, %v661_v40  ;;  %v1900_v35 = vld [vmem:[%s2154_s27 + $0x68] sm:$0xff]   ;;  %v732_v38 = vadd.s32 72, %v2166_v27  ;;  %v731_v39 = vadd.s32 64, %v2166_v27  ;;  %1803 = vmatprep.subr.bf16.mxu0 %v1899_v33 }
  0xfb   : > { %844 = vmax.xlane.f32.xlu1 %v2182_v41  ;;  %1835 = vmatprep.subr.bf16.mxu1 %v1900_v35 }
  0xfc   : > { %838 = vmax.xlane.f32.xlu0 %v2184_v42  ;;  %1804 = vmatpush3.bf16.msra.mxu0 %v1899_v33  ;;  %vm767_vm11 = vcmp.gt.s32.totalorder %v2169_v29, %v732_v38  ;;  %vm766_vm12 = vcmp.gt.s32.totalorder %v2169_v29, %v731_v39 }
  0xfd   : > { %v1759_v44 = vpop.f32.mrb[4].mxu0  ;;  %1836 = vmatpush3.bf16.msra.mxu1 %v1900_v35  ;;  %1805 = vmatprep.subr.bf16.mxu0 %v1901_v43 }
  0xfe   : > { %v489_v46 = vpop.f32.mrb[5].mxu0  ;;  %v1783_v47 = vpop.f32.mrb[4].mxu1  ;;  %v2222_v0 = vsel %vm764_vm6, -2.3819763e+38, %v1759_v44  ;;  %v1902_v44 = vld [vmem:[%s2154_s27 + $0x70] sm:$0xff]  }
  0xff   : > { %876 = vmax.xlane.f32.xlu1 %v2189_v45  ;;  %v1760_v49 = vpop.f32.mrb[6].mxu0  ;;  %v2195_v50 = vpop.f32.mrb[5].mxu1  ;;  %v2242_v11 = vsel %vm764_vm6, -2.3819763e+38, %v1783_v47  ;;  %v2262_v18 = vsel %vm762_vm8, -2.3819763e+38, %v489_v46  ;;  %1837 = vmatprep.subr.bf16.mxu1 %v1902_v44 }
 0x100   : > { %870 = vmax.xlane.f32.xlu0 %v2191_v48  ;;  %v492_v52 = vpop.f32.mrb[7].mxu0  ;;  %v1784_v53 = vpop.f32.mrb[6].mxu1  ;;  %v2212_v59 = vsel %vm765_vm5, -2.3819763e+38, %v1760_v49  ;;  %v2287_v31 = vsel %vm762_vm8, -2.3819763e+38, %v2195_v50  ;;  %1806 = vmatpush3.bf16.msra.mxu0 %v1901_v43 }
 0x101   : > { %v677_v55 = vpop.f32.mrb[7].mxu1  ;;  %v2236_v8 = vsel %vm765_vm5, -2.3819763e+38, %v1784_v53  ;;  %v2252_v13 = vsel %vm763_vm7, -2.3819763e+38, %v492_v52  ;;  %1838 = vmatpush3.bf16.msra.mxu1 %v1902_v44  ;;  %v1903_v49 = vld [vmem:[%s2154_s27 + $0x38] sm:$0xff]  }
 0x102   : > { %v2280_v26 = vsel %vm763_vm7, -2.3819763e+38, %v677_v55  ;;  %v1904_v50 = vld [vmem:[%s2154_s27 + $0x78] sm:$0xff]   ;;  %v738_v52 = vadd.s32 120, %v2166_v27  ;;  %v737_v53 = vadd.s32 112, %v2166_v27  ;;  %1807 = vmatprep.subr.bf16.mxu0 %v1903_v49 }
 0x103   : > { %872 = vmax.xlane.f32.xlu1 %v2200_v56  ;;  %1839 = vmatprep.subr.bf16.mxu1 %v1904_v50 }
 0x104   : > { %840 = vmax.xlane.f32.xlu0 %v2203_v57  ;;  %1808 = vmatpush3.bf16.msra.mxu0 %v1903_v49  ;;  %vm773_vm13 = vcmp.gt.s32.totalorder %v2169_v29, %v738_v52  ;;  %vm772_vm14 = vcmp.gt.s32.totalorder %v2169_v29, %v737_v53 }
 0x105   : > { %v2208_v58 = vpop.f32.mrb[8].mxu0  ;;  %1840 = vmatpush3.bf16.msra.mxu1 %v1904_v50 }
 0x106   : > { %v2214_v60 = vpop.f32.mrb[9].mxu0  ;;  %v2216_v61 = vpop.f32.mrb[8].mxu1  ;;  %v2302_v37 = vsel %vm768_vm10, -2.3819763e+38, %v2208_v58  ;;  %v736_v58 = vadd.s32 104, %v2166_v27 }
 0x107   : > { %852 = vmax.xlane.f32.xlu1 %v2212_v59  ;;  %v1764_v2 = vpop.f32.mrb[10].mxu0  ;;  %v2226_v3 = vpop.f32.mrb[9].mxu1  ;;  %v2317_v46 = vsel %vm768_vm10, -2.3819763e+38, %v2216_v61  ;;  %v2333_v51 = vsel %vm766_vm12, -2.3819763e+38, %v2214_v60 }
 0x108   : > { %850 = vmax.xlane.f32.xlu0 %v2222_v0  ;;  %v2230_v5 = vpop.f32.mrb[11].mxu0  ;;  %v1788_v6 = vpop.f32.mrb[10].mxu1  ;;  %v2295_v32 = vsel %vm769_vm9, -2.3819763e+38, %v1764_v2  ;;  %v2347_v55 = vsel %vm766_vm12, -2.3819763e+38, %v2226_v3  ;;  %vm771_vm15 = vcmp.gt.s32.totalorder %v2169_v29, %v736_v58 }
 0x109   : > { %v2232_v7 = vpop.f32.mrb[11].mxu1  ;;  %v2310_v40 = vsel %vm769_vm9, -2.3819763e+38, %v1788_v6  ;;  %v2326_v47 = vsel %vm767_vm11, -2.3819763e+38, %v2230_v5  ;;  %v735_v60 = vadd.s32 96, %v2166_v27 }
 0x10a   : > { %v2342_v54 = vsel %vm767_vm11, -2.3819763e+38, %v2232_v7 }
 0x10b   : > { %884 = vmax.xlane.f32.xlu1 %v2236_v8  ;;  %vm770_vm1 = vcmp.gt.s32.totalorder %v2169_v29, %v735_v60 }
 0x10c   : > { %882 = vmax.xlane.f32.xlu0 %v2242_v11 }
 0x10d   : > { %v2248_v12 = vpop.f32.mrb[12].mxu0 }
 0x10e   : > { %v2254_v14 = vpop.f32.mrb[13].mxu0  ;;  %v2256_v15 = vpop.f32.mrb[12].mxu1  ;;  %v2363_v62 = vsel %vm772_vm14, -2.3819763e+38, %v2248_v12 }
 0x10f   : > { %848 = vmax.xlane.f32.xlu1 %v2252_v13  ;;  %v2266_v20 = vpop.f32.mrb[14].mxu0  ;;  %v2268_v21 = vpop.f32.mrb[13].mxu1  ;;  %v2373_v63 = vsel %vm770_vm1, -2.3819763e+38, %v2254_v14  ;;  %v2393_v4 = vsel %vm772_vm14, -2.3819763e+38, %v2256_v15 }
 0x110   : > { %846 = vmax.xlane.f32.xlu0 %v2262_v18  ;;  %v2272_v23 = vpop.f32.mrb[15].mxu0  ;;  %v2274_v24 = vpop.f32.mrb[14].mxu1  ;;  %v2358_v61 = vsel %vm773_vm13, -2.3819763e+38, %v2266_v20  ;;  %v2381_v2 = vsel %vm770_vm1, -2.3819763e+38, %v2268_v21 }
 0x111   : > { %v2276_v25 = vpop.f32.mrb[15].mxu1  ;;  %v2370_v27 = vsel %vm771_vm15, -2.3819763e+38, %v2272_v23  ;;  %v2388_v3 = vsel %vm773_vm13, -2.3819763e+38, %v2274_v24 }
 0x112   : > { %v2378_v1 = vsel %vm771_vm15, -2.3819763e+38, %v2276_v25 }
 0x113   : > { %880 = vmax.xlane.f32.xlu1 %v2280_v26 }
 0x114   : > { %878 = vmax.xlane.f32.xlu0 %v2287_v31 }
 0x117   : > { %860 = vmax.xlane.f32.xlu1 %v2295_v32 }
 0x118   : > { %858 = vmax.xlane.f32.xlu0 %v2302_v37 }
 0x11b   : > { %892 = vmax.xlane.f32.xlu1 %v2310_v40 }
 0x11c   : > { %890 = vmax.xlane.f32.xlu0 %v2317_v46 }
 0x11f   : > { %856 = vmax.xlane.f32.xlu1 %v2326_v47 }
 0x120   : > { %854 = vmax.xlane.f32.xlu0 %v2333_v51 }
 0x123   : > { %888 = vmax.xlane.f32.xlu1 %v2342_v54 }
 0x124   : > { %886 = vmax.xlane.f32.xlu0 %v2347_v55 }
 0x127   : > { %868 = vmax.xlane.f32.xlu1 %v2358_v61 }
 0x128   : > { %866 = vmax.xlane.f32.xlu0 %v2363_v62 }
 0x12b   : > { %864 = vmax.xlane.f32.xlu1 %v2370_v27 }
 0x12c   : > { %862 = vmax.xlane.f32.xlu0 %v2373_v63 }
 0x12f   : > { %896 = vmax.xlane.f32.xlu1 %v2378_v1 }
 0x130   : > { %894 = vmax.xlane.f32.xlu0 %v2381_v2 }
 0x133   : > { %900 = vmax.xlane.f32.xlu1 %v2388_v3 }
 0x134   : > { %898 = vmax.xlane.f32.xlu0 %v2393_v4 }
 0x184   : > { %v843_v5 = vpop.xlane.xlu1 %842 }
 0x185   : > { %v875_v6 = vpop.xlane.xlu0 %874  ;;  %v904_v7 = vsub.f32 %v2173_v34, %v843_v5 }
 0x186   : > { %v920_v9 = vsub.f32 %v2175_v36, %v875_v6 }
 0x187   : > { %v938_v10 = vmul.f32 1.442695, %v904_v7 }
 0x188   : > { %v970_v12 = vmul.f32 1.442695, %v920_v9  ;;  %v845_v14 = vpop.xlane.xlu1 %844 }
 0x189   : > { %1905 = vpow2.f32 %v938_v10  ;;  %v839_v16 = vpop.xlane.xlu0 %838  ;;  %v905_v17 = vsub.f32 %v2182_v41, %v845_v14 }
 0x18a   : > { %v902_v29 = vsub.f32 %v2184_v42, %v839_v16  ;;  %1907 = vpow2.f32 %v970_v12 }
 0x18b   : > { %v940_v15 = vmul.f32 1.442695, %v905_v17 }
 0x18c   : > { %v934_v19 = vmul.f32 1.442695, %v902_v29  ;;  %v877_v20 = vpop.xlane.xlu1 %876 }
 0x18d   : > { %1909 = vpow2.f32 %v940_v15  ;;  %v871_v21 = vpop.xlane.xlu0 %870  ;;  %v921_v22 = vsub.f32 %v2189_v45, %v877_v20 }
 0x18e   : > { %v918_v34 = vsub.f32 %v2191_v48, %v871_v21  ;;  %1911 = vpow2.f32 %v934_v19 }
 0x18f   : > { %v972_v36 = vmul.f32 1.442695, %v921_v22 }
 0x190   : > { %v966_v23 = vmul.f32 1.442695, %v918_v34  ;;  %v873_v24 = vpop.xlane.xlu1 %872 }
 0x191   : > { %1913 = vpow2.f32 %v972_v36  ;;  %v919_v25 = vsub.f32 %v2200_v56, %v873_v24  ;;  %v841_v41 = vpop.xlane.xlu0 %840 }
 0x192   : > { %v903_v42 = vsub.f32 %v2203_v57, %v841_v41  ;;  %1915 = vpow2.f32 %v966_v23 }
 0x193   : > { %v1906_v28 = vpop.eup %1905  ;;  %v968_v30 = vmul.f32 1.442695, %v919_v25 }
 0x194   : > { %v936_v33 = vmul.f32 1.442695, %v903_v42  ;;  %v853_v35 = vpop.xlane.xlu1 %852  ;;  %1002 = vadd.xlane.f32.xlu0 %v1906_v28  ;;  %v1908_v38 = vpop.eup %1907 }
 0x195   : > { %1917 = vpow2.f32 %v968_v30  ;;  %v851_v45 = vpop.xlane.xlu0 %850  ;;  %v909_v48 = vsub.f32 %v2212_v59, %v853_v35 }
 0x196   : > { %1919 = vpow2.f32 %v936_v33  ;;  %v908_v39 = vsub.f32 %v2222_v0, %v851_v45 }
 0x197   : > { %v1910_v43 = vpop.eup %1909  ;;  %v948_v57 = vmul.f32 1.442695, %v909_v48 }
 0x198   : > { %v946_v44 = vmul.f32 1.442695, %v908_v39  ;;  %v885_v56 = vpop.xlane.xlu1 %884  ;;  %1034 = vadd.xlane.f32.xlu0 %v1908_v38  ;;  %1004 = vadd.xlane.f32.xlu1 %v1910_v43  ;;  %v1912_v52 = vpop.eup %1911 }
 0x199   : > { %v883_v49 = vpop.xlane.xlu0 %882  ;;  %v925_v50 = vsub.f32 %v2236_v8, %v885_v56 }
 0x19a   : > { %1921 = vpow2.f32 %v946_v44  ;;  %v924_v53 = vsub.f32 %v2242_v11, %v883_v49 }
 0x19b   : > { %v1914_v58 = vpop.eup %1913  ;;  %v980_v59 = vmul.f32 1.442695, %v925_v50  ;;  %1923 = vpow2.f32 %v948_v57 }
 0x19c   : > { %v978_v60 = vmul.f32 1.442695, %v924_v53  ;;  %v849_v5 = vpop.xlane.xlu1 %848  ;;  %998 = vadd.xlane.f32.xlu0 %v1912_v52  ;;  %1036 = vadd.xlane.f32.xlu1 %v1914_v58  ;;  %v1916_v7 = vpop.eup %1915  ;;  %v1071_v19 = vpack.c.bf16 %v1914_v58, %v1908_v38 }
 0x19d   : > { %v847_v0 = vpop.xlane.xlu0 %846  ;;  %v907_v6 = vsub.f32 %v2252_v13, %v849_v5 }
 0x19e   : > { %1925 = vpow2.f32 %v978_v60  ;;  %v906_v9 = vsub.f32 %v2262_v18, %v847_v0  ;;  %v1063_v18 = vpack.c.bf16 %v1910_v43, %v1906_v28 }
 0x19f   : > { %v1918_v10 = vpop.eup %1917  ;;  %v944_v8 = vmul.f32 1.442695, %v907_v6  ;;  %1927 = vpow2.f32 %v980_v59 }
 0x1a0   : > { %v1920_v12 = vpop.eup %1919  ;;  %v942_v14 = vmul.f32 1.442695, %v906_v9  ;;  %v881_v11 = vpop.xlane.xlu1 %880  ;;  %1030 = vadd.xlane.f32.xlu0 %v1916_v7  ;;  %v1070_v16 = vpack.c.bf16 %v1918_v10, %v1916_v7 }
 0x1a1   : > { %1929 = vpow2.f32 %v944_v8  ;;  %v879_v17 = vpop.xlane.xlu0 %878  ;;  %v923_v29 = vsub.f32 %v2280_v26, %v881_v11  ;;  %1000 = vadd.xlane.f32.xlu1 %v1920_v12  ;;  %v1062_v15 = vpack.c.bf16 %v1920_v12, %v1912_v52 }
 0x1a2   : > { %1931 = vpow2.f32 %v942_v14  ;;  %v922_v13 = vsub.f32 %v2287_v31, %v879_v17  ;;  %1841 = vmatprep.mubr.bf16.mxu1 %v1070_v16 }
 0x1a3   : > { %v976_v20 = vmul.f32 1.442695, %v923_v29  ;;  %1809 = vmatprep.mubr.bf16.mxu0 %v1062_v15  ;;  %1842 = vmatmul.mubr.bf16.vlgmr.msra.gmra.mrb[16].mxu1 %v1071_v19 }
 0x1a4   : > { %v1922_v21 = vpop.eup %1921  ;;  %v974_v22 = vmul.f32 1.442695, %v922_v13  ;;  %1810 = vmatmul.mubr.bf16.vlgmr.msra.gmra.mrb[16].mxu0 %v1063_v18  ;;  %v861_v34 = vpop.xlane.xlu1 %860 }
 0x1a5   : > { %1933 = vpow2.f32 %v976_v20  ;;  %v859_v36 = vpop.xlane.xlu0 %858  ;;  %v913_v23 = vsub.f32 %v2295_v32, %v861_v34  ;;  %1010 = vadd.xlane.f32.xlu0 %v1922_v21  ;;  %1032 = vadd.xlane.f32.xlu1 %v1918_v10  ;;  %v1924_v24 = vpop.eup %1923 }
 0x1a6   : > { %1935 = vpow2.f32 %v974_v22  ;;  %v912_v26 = vsub.f32 %v2302_v37, %v859_v36  ;;  %v1065_v56 = vpack.c.bf16 %v1924_v24, %v1922_v21 }
 0x1a7   : > { %v956_v42 = vmul.f32 1.442695, %v913_v23 }
 0x1a8   : > { %v1926_v31 = vpop.eup %1925  ;;  %v954_v25 = vmul.f32 1.442695, %v912_v26  ;;  %v893_v41 = vpop.xlane.xlu1 %892 }
 0x1a9   : > { %v891_v28 = vpop.xlane.xlu0 %890  ;;  %v929_v30 = vsub.f32 %v2310_v40, %v893_v41  ;;  %1042 = vadd.xlane.f32.xlu0 %v1926_v31  ;;  %1012 = vadd.xlane.f32.xlu1 %v1924_v24  ;;  %v1928_v33 = vpop.eup %1927 }
 0x1aa   : > { %1937 = vpow2.f32 %v954_v25  ;;  %v928_v35 = vsub.f32 %v2317_v46, %v891_v28 }
 0x1ab   : > { %v1930_v32 = vpop.eup %1929  ;;  %v988_v38 = vmul.f32 1.442695, %v929_v30  ;;  %1939 = vpow2.f32 %v956_v42 }
 0x1ac   : > { %v1932_v45 = vpop.eup %1931  ;;  %v986_v48 = vmul.f32 1.442695, %v928_v35  ;;  %v857_v39 = vpop.xlane.xlu1 %856 }
 0x1ad   : > { %v855_v37 = vpop.xlane.xlu0 %854  ;;  %v911_v43 = vsub.f32 %v2326_v47, %v857_v39  ;;  %1006 = vadd.xlane.f32.xlu0 %v1932_v45  ;;  %1044 = vadd.xlane.f32.xlu1 %v1928_v33  ;;  %v1064_v44 = vpack.c.bf16 %v1930_v32, %v1932_v45 }
 0x1ae   : > { %1941 = vpow2.f32 %v986_v48  ;;  %v910_v40 = vsub.f32 %v2333_v51, %v855_v37  ;;  %v1073_v51 = vpack.c.bf16 %v1928_v33, %v1926_v31 }
 0x1af   : > { %v1934_v57 = vpop.eup %1933  ;;  %v952_v49 = vmul.f32 1.442695, %v911_v43  ;;  %1813 = vmatprep.mubr.bf16.mxu0 %v1064_v44  ;;  %1943 = vpow2.f32 %v988_v38 }
 0x1b0   : > { %v1936_v46 = vpop.eup %1935  ;;  %v950_v50 = vmul.f32 1.442695, %v910_v40  ;;  %1814 = vmatmul.mubr.bf16.gmra.mrb[20].mxu0 %v1065_v56  ;;  %v889_v52 = vpop.xlane.xlu1 %888 }
 0x1b1   : > { %1945 = vpow2.f32 %v952_v49  ;;  %v887_v53 = vpop.xlane.xlu0 %886  ;;  %v927_v58 = vsub.f32 %v2342_v54, %v889_v52  ;;  %1038 = vadd.xlane.f32.xlu0 %v1936_v46  ;;  %1008 = vadd.xlane.f32.xlu1 %v1930_v32  ;;  %v1072_v47 = vpack.c.bf16 %v1934_v57, %v1936_v46 }
 0x1b2   : > { %1947 = vpow2.f32 %v950_v50  ;;  %v926_v60 = vsub.f32 %v2347_v55, %v887_v53 }
 0x1b3   : > { %v984_v59 = vmul.f32 1.442695, %v927_v58  ;;  %1845 = vmatprep.mubr.bf16.mxu1 %v1072_v47 }
 0x1b4   : > { %v1938_v5 = vpop.eup %1937  ;;  %v982_v0 = vmul.f32 1.442695, %v926_v60  ;;  %1846 = vmatmul.mubr.bf16.gmra.mrb[20].mxu1 %v1073_v51  ;;  %v869_v6 = vpop.xlane.xlu1 %868 }
 0x1b5   : > { %1949 = vpow2.f32 %v984_v59  ;;  %v867_v7 = vpop.xlane.xlu0 %866  ;;  %1018 = vadd.xlane.f32.xlu0 %v1938_v5  ;;  %v917_v9 = vsub.f32 %v2358_v61, %v869_v6  ;;  %1040 = vadd.xlane.f32.xlu1 %v1934_v57  ;;  %v1940_v10 = vpop.eup %1939 }
 0x1b6   : > { %1951 = vpow2.f32 %v982_v0  ;;  %v916_v54 = vsub.f32 %v2363_v62, %v867_v7  ;;  %v1067_v22 = vpack.c.bf16 %v1940_v10, %v1938_v5 }
 0x1b7   : > { %v964_v55 = vmul.f32 1.442695, %v917_v9 }
 0x1b8   : > { %v1942_v8 = vpop.eup %1941  ;;  %v962_v12 = vmul.f32 1.442695, %v916_v54  ;;  %v865_v14 = vpop.xlane.xlu1 %864 }
 0x1b9   : > { %1050 = vadd.xlane.f32.xlu0 %v1942_v8  ;;  %v863_v11 = vpop.xlane.xlu0 %862  ;;  %1020 = vadd.xlane.f32.xlu1 %v1940_v10  ;;  %v915_v16 = vsub.f32 %v2370_v27, %v865_v14  ;;  %v1944_v17 = vpop.eup %1943 }
 0x1ba   : > { %1953 = vpow2.f32 %v962_v12  ;;  %v914_v29 = vsub.f32 %v2373_v63, %v863_v11  ;;  %v1075_v41 = vpack.c.bf16 %v1944_v17, %v1942_v8 }
 0x1bb   : > { %v1946_v15 = vpop.eup %1945  ;;  %v960_v61 = vmul.f32 1.442695, %v915_v16  ;;  %1955 = vpow2.f32 %v964_v55 }
 0x1bc   : > { %v1948_v19 = vpop.eup %1947  ;;  %v958_v13 = vmul.f32 1.442695, %v914_v29  ;;  %v897_v62 = vpop.xlane.xlu1 %896 }
 0x1bd   : > { %1957 = vpow2.f32 %v960_v61  ;;  %1014 = vadd.xlane.f32.xlu0 %v1948_v19  ;;  %v895_v18 = vpop.xlane.xlu0 %894  ;;  %1052 = vadd.xlane.f32.xlu1 %v1944_v17  ;;  %v931_v20 = vsub.f32 %v2378_v1, %v897_v62  ;;  %v1066_v21 = vpack.c.bf16 %v1946_v15, %v1948_v19 }
 0x1be   : > { %1959 = vpow2.f32 %v958_v13  ;;  %v930_v27 = vsub.f32 %v2381_v2, %v895_v18 }
 0x1bf   : > { %v1950_v34 = vpop.eup %1949  ;;  %v992_v36 = vmul.f32 1.442695, %v931_v20  ;;  %1817 = vmatprep.mubr.bf16.mxu0 %v1066_v21 }
 0x1c0   : > { %v1952_v63 = vpop.eup %1951  ;;  %v990_v23 = vmul.f32 1.442695, %v930_v27  ;;  %1818 = vmatmul.mubr.bf16.gmra.mrb[24].mxu0 %v1067_v22  ;;  %v901_v26 = vpop.xlane.xlu1 %900 }
 0x1c1   : > { %1961 = vpow2.f32 %v992_v36  ;;  %1046 = vadd.xlane.f32.xlu0 %v1952_v63  ;;  %v899_v24 = vpop.xlane.xlu0 %898  ;;  %1016 = vadd.xlane.f32.xlu1 %v1946_v15  ;;  %v933_v31 = vsub.f32 %v2388_v3, %v901_v26  ;;  %v1074_v25 = vpack.c.bf16 %v1950_v34, %v1952_v63 }
 0x1c2   : > { %1963 = vpow2.f32 %v990_v23  ;;  %v932_v1 = vsub.f32 %v2393_v4, %v899_v24 }
 0x1c3   : > { %v996_v2 = vmul.f32 1.442695, %v933_v31  ;;  %1849 = vmatprep.mubr.bf16.mxu1 %v1074_v25 }
 0x1c4   : > { %v1954_v42 = vpop.eup %1953  ;;  %v994_v28 = vmul.f32 1.442695, %v932_v1  ;;  %1850 = vmatmul.mubr.bf16.gmra.mrb[24].mxu1 %v1075_v41 }
 0x1c5   : > { %1965 = vpow2.f32 %v996_v2  ;;  %1026 = vadd.xlane.f32.xlu0 %v1954_v42  ;;  %1048 = vadd.xlane.f32.xlu1 %v1950_v34  ;;  %v1956_v30 = vpop.eup %1955 }
 0x1c6   : > { %1967 = vpow2.f32 %v994_v28  ;;  %v1069_v32 = vpack.c.bf16 %v1956_v30, %v1954_v42 }
 0x1c7   : > { %v1958_v33 = vpop.eup %1957 }
 0x1c8   : > { %v1960_v35 = vpop.eup %1959 }
 0x1c9   : > { %1022 = vadd.xlane.f32.xlu0 %v1960_v35  ;;  %1028 = vadd.xlane.f32.xlu1 %v1956_v30  ;;  %v1068_v3 = vpack.c.bf16 %v1958_v33, %v1960_v35 }
 0x1cb   : > { %v1962_v45 = vpop.eup %1961  ;;  %1821 = vmatprep.mubr.bf16.mxu0 %v1068_v3 }
 0x1cc   : > { %v1964_v4 = vpop.eup %1963  ;;  %1822 = vmatmul.mubr.bf16.gmra.mrb[28].mxu0 %v1069_v32 }
 0x1cd   : > { %1054 = vadd.xlane.f32.xlu0 %v1964_v4  ;;  %1024 = vadd.xlane.f32.xlu1 %v1958_v33  ;;  %v1076_v48 = vpack.c.bf16 %v1962_v45, %v1964_v4 }
 0x1cf   : > { %v1966_v38 = vpop.eup %1965  ;;  %1853 = vmatprep.mubr.bf16.mxu1 %v1076_v48 }
 0x1d0   : > { %v1968_v39 = vpop.eup %1967 }
 0x1d1   : > { %1058 = vadd.xlane.f32.xlu0 %v1968_v39  ;;  %1056 = vadd.xlane.f32.xlu1 %v1962_v45  ;;  %v1077_v37 = vpack.c.bf16 %v1966_v38, %v1968_v39 }
 0x1d3   : > { %1854 = vmatmul.mubr.bf16.gmra.mrb[28].mxu1 %v1077_v37 }
 0x1d5   : > { %1060 = vadd.xlane.f32.xlu1 %v1966_v38 }
 0x221   : > { %v1003_v43 = vpop.xlane.xlu0 %1002 }
 0x222   : > { %1969 = vrcp.f32 %v1003_v43 }
 0x225   : > { %v1005_v44 = vpop.xlane.xlu1 %1004  ;;  %v1035_v40 = vpop.xlane.xlu0 %1034 }
 0x226   : > { %1971 = vrcp.f32 %v1035_v40 }
 0x227   : > { %1973 = vrcp.f32 %v1005_v44 }
 0x229   : > { %v1037_v56 = vpop.xlane.xlu1 %1036  ;;  %v999_v57 = vpop.xlane.xlu0 %998 }
 0x22a   : > { %1975 = vrcp.f32 %v999_v57 }
 0x22c   : > { %v1970_v7 = vpop.eup %1969 }
 0x22d   : > { %v1031_v46 = vpop.xlane.xlu0 %1030 }
 0x22e   : > { %v1001_v49 = vpop.xlane.xlu1 %1000  ;;  %1977 = vrcp.f32 %v1031_v46 }
 0x22f   : > { %1979 = vrcp.f32 %v1037_v56 }
 0x230   : > { %v1972_v9 = vpop.eup %1971 }
 0x231   : > { %v1974_v54 = vpop.eup %1973 }
 0x232   : > { %v1033_v50 = vpop.xlane.xlu1 %1032  ;;  %v1011_v52 = vpop.xlane.xlu0 %1010 }
 0x233   : > { %1981 = vrcp.f32 %v1033_v50 }
 0x234   : > { %1983 = vrcp.f32 %v1001_v49  ;;  %v1976_v8 = vpop.eup %1975 }
 0x235   : > { %1985 = vrcp.f32 %v1011_v52 }
 0x236   : > { %v1013_v53 = vpop.xlane.xlu1 %1012  ;;  %v1043_v58 = vpop.xlane.xlu0 %1042 }
 0x238   : > { %v1978_v14 = vpop.eup %1977 }
 0x239   : > { %v1980_v29 = vpop.eup %1979 }
 0x23a   : > { %v1045_v47 = vpop.xlane.xlu1 %1044  ;;  %v1007_v60 = vpop.xlane.xlu0 %1006 }
 0x23b   : > { %1987 = vrcp.f32 %v1007_v60 }
 0x23c   : > { %1989 = vrcp.f32 %v1013_v53 }
 0x23d   : > { %v1982_v62 = vpop.eup %1981 }
 0x23e   : > { %v1009_v51 = vpop.xlane.xlu1 %1008  ;;  %v1039_v59 = vpop.xlane.xlu0 %1038 }
 0x23f   : > { %v1984_v22 = vpop.eup %1983  ;;  %1991 = vrcp.f32 %v1009_v51 }
 0x240   : > { %1993 = vrcp.f32 %v1043_v58  ;;  %v1986_v25 = vpop.eup %1985 }
 0x241   : > { %1995 = vrcp.f32 %v1039_v59 }
 0x242   : > { %v1041_v5 = vpop.xlane.xlu1 %1040  ;;  %v2429_v0 = vpop.xlane.xlu0 %1018  ;;  %1997 = vrcp.f32 %v1045_v47 }
 0x243   : > { %1999 = vrcp.f32 %v1041_v5 }
 0x244   : > { %2001 = vrcp.f32 %v2429_v0 }
 0x245   : > { %v1988_v2 = vpop.eup %1987 }
 0x246   : > { %v2431_v6 = vpop.xlane.xlu1 %1020  ;;  %v2434_v10 = vpop.xlane.xlu0 %1050 }
 0x247   : > { %v1990_v30 = vpop.eup %1989 }
 0x249   : > { %v1992_v3 = vpop.eup %1991 }
 0x24a   : > { %v2436_v12 = vpop.xlane.xlu1 %1052  ;;  %v1015_v23 = vpop.xlane.xlu0 %1014 }
 0x24b   : > { %v1994_v4 = vpop.eup %1993  ;;  %2003 = vrcp.f32 %v1015_v23 }
 0x24c   : > { %v1996_v37 = vpop.eup %1995  ;;  %2005 = vrcp.f32 %v2431_v6 }
 0x24d   : > { %v1998_v40 = vpop.eup %1997 }
 0x24e   : > { %v1017_v24 = vpop.xlane.xlu1 %1016  ;;  %v1047_v31 = vpop.xlane.xlu0 %1046 }
 0x24f   : > { %v2000_v46 = vpop.eup %1999  ;;  %2007 = vrcp.f32 %v1017_v24 }
 0x250   : > { %2009 = vrcp.f32 %v2434_v10  ;;  %v2002_v60 = vpop.eup %2001 }
 0x251   : > { %2011 = vrcp.f32 %v1047_v31 }
 0x252   : > { %v1049_v1 = vpop.xlane.xlu1 %1048  ;;  %v1027_v48 = vpop.xlane.xlu0 %1026  ;;  %2013 = vrcp.f32 %v2436_v12 }
 0x253   : > { %2015 = vrcp.f32 %v1049_v1 }
 0x254   : > { %2017 = vrcp.f32 %v1027_v48 }
 0x255   : > { %v2004_v5 = vpop.eup %2003 }
 0x256   : > { %v1029_v56 = vpop.xlane.xlu1 %1028  ;;  %v1023_v58 = vpop.xlane.xlu0 %1022 }
 0x257   : > { %2019 = vrcp.f32 %v1023_v58 }
 0x258   : > { %2021 = vrcp.f32 %v1029_v56 }
 0x25a   : > { %v1025_v47 = vpop.xlane.xlu1 %1024  ;;  %v1055_v51 = vpop.xlane.xlu0 %1054 }
 0x25b   : > { %2023 = vrcp.f32 %v1025_v47 }
 0x276   : > { %v1843_v55 = vpop.f32.mrb[16].mxu1 }
 0x277   : > { %v1811_v11 = vpop.f32.mrb[16].mxu0  ;;  %v1450_v16 = vmul.f32 %v1972_v9, %v1843_v55  ;;  %v1337_v17 = vpop.f32.mrb[17].mxu1 }
 0x278   : > { %v1434_v15 = vmul.f32 %v1970_v7, %v1811_v11  ;;  %v1192_v61 = vpop.f32.mrb[17].mxu0  ;;  %v1448_v19 = vmul.f32 %v1978_v14, %v1337_v17  ;;  %v1844_v13 = vpop.f32.mrb[18].mxu1 }
 0x279   : > { %v1432_v18 = vmul.f32 %v1976_v8, %v1192_v61  ;;  %v1812_v20 = vpop.f32.mrb[18].mxu0  ;;  %v1451_v21 = vmul.f32 %v1980_v29, %v1844_v13  ;;  %v1340_v27 = vpop.f32.mrb[19].mxu1  ;;  %1482 = vst.msk [vmem:[%s2441_s4 + $0x90] sm:$0xff] %vm414_vm0, %v1450_v16 }
 0x27a   : > { %1466 = vst.msk [vmem:[%s2441_s4 + $0x10] sm:$0xff] %vm414_vm0, %v1434_v15  ;;  %v1435_v34 = vmul.f32 %v1974_v54, %v1812_v20  ;;  %v1195_v36 = vpop.f32.mrb[19].mxu0  ;;  %v1449_v63 = vmul.f32 %v1982_v62, %v1340_v27  ;;  %1480 = vst.msk [vmem:[%s2441_s4 + $0x80] sm:$0xff] %vm414_vm0, %v1448_v19  ;;  %v2006_v7 = vpop.eup %2005 }
 0x27b   : > { %1464 = vst.msk [vmem:[%s2441_s4] sm:$0xff] %vm414_vm0, %v1432_v18  ;;  %v1433_v26 = vmul.f32 %v1984_v22, %v1195_v36  ;;  %1483 = vst.msk [vmem:[%s2441_s4 + $0x98] sm:$0xff] %vm414_vm0, %v1451_v21  ;;  %v1057_v9 = vpop.xlane.xlu1 %1056  ;;  %v2008_v8 = vpop.eup %2007 }
 0x27c   : > { %1467 = vst.msk [vmem:[%s2441_s4 + $0x18] sm:$0xff] %vm414_vm0, %v1435_v34  ;;  %1481 = vst.msk [vmem:[%s2441_s4 + $0x88] sm:$0xff] %vm414_vm0, %v1449_v63  ;;  %v2010_v14 = vpop.eup %2009  ;;  %v1059_v19 = vpop.xlane.xlu0 %1058 }
 0x27d   : > { %1465 = vst.msk [vmem:[%s2441_s4 + $0x8] sm:$0xff] %vm414_vm0, %v1433_v26  ;;  %v2012_v17 = vpop.eup %2011  ;;  %2025 = vrcp.f32 %v1059_v19 }
 0x27e   : > { %v2014_v61 = vpop.eup %2013  ;;  %2027 = vrcp.f32 %v1055_v51 }
 0x27f   : > { %v2016_v18 = vpop.eup %2015  ;;  %v1061_v27 = vpop.xlane.xlu1 %1060 }
 0x280   : > { %2029 = vrcp.f32 %v1061_v27  ;;  %v2018_v34 = vpop.eup %2017 }
 0x281   : > { %2031 = vrcp.f32 %v1057_v9  ;;  %v2020_v63 = vpop.eup %2019 }
 0x282   : > { %v2022_v24 = vpop.eup %2021 }
 0x283   : > { %v1815_v41 = vpop.f32.mrb[20].mxu0  ;;  %v2024_v1 = vpop.eup %2023 }
 0x284   : > { %v1438_v42 = vmul.f32 %v1986_v25, %v1815_v41  ;;  %v1208_v28 = vpop.f32.mrb[21].mxu0 }
 0x285   : > { %v1436_v33 = vmul.f32 %v1988_v2, %v1208_v28  ;;  %v1816_v35 = vpop.f32.mrb[22].mxu0 }
 0x286   : > { %1470 = vst.msk [vmem:[%s2441_s4 + $0x30] sm:$0xff] %vm414_vm0, %v1438_v42  ;;  %v1439_v32 = vmul.f32 %v1990_v30, %v1816_v35  ;;  %v1211_v45 = vpop.f32.mrb[23].mxu0 }
 0x287   : > { %1468 = vst.msk [vmem:[%s2441_s4 + $0x20] sm:$0xff] %vm414_vm0, %v1436_v33  ;;  %v1437_v38 = vmul.f32 %v1992_v3, %v1211_v45  ;;  %v1847_v39 = vpop.f32.mrb[20].mxu1  ;;  %v2026_v28 = vpop.eup %2025 }
 0x288   : > { %1471 = vst.msk [vmem:[%s2441_s4 + $0x38] sm:$0xff] %vm414_vm0, %v1439_v32  ;;  %v1454_v43 = vmul.f32 %v1994_v4, %v1847_v39  ;;  %v1353_v44 = vpop.f32.mrb[21].mxu1  ;;  %v2028_v33 = vpop.eup %2027 }
 0x289   : > { %1469 = vst.msk [vmem:[%s2441_s4 + $0x28] sm:$0xff] %vm414_vm0, %v1437_v38  ;;  %v1452_v57 = vmul.f32 %v1996_v37, %v1353_v44  ;;  %v1848_v49 = vpop.f32.mrb[22].mxu1 }
 0x28a   : > { %1486 = vst.msk [vmem:[%s2441_s4 + $0xb0] sm:$0xff] %vm414_vm0, %v1454_v43  ;;  %v1455_v50 = vmul.f32 %v1998_v40, %v1848_v49  ;;  %v1356_v52 = vpop.f32.mrb[23].mxu1  ;;  %v2030_v32 = vpop.eup %2029 }
 0x28b   : > { %1484 = vst.msk [vmem:[%s2441_s4 + $0xa0] sm:$0xff] %vm414_vm0, %v1452_v57  ;;  %v1453_v53 = vmul.f32 %v2000_v46, %v1356_v52  ;;  %v2032_v48 = vpop.eup %2031 }
 0x28c   : > { %1487 = vst.msk [vmem:[%s2441_s4 + $0xb8] sm:$0xff] %vm414_vm0, %v1455_v50 }
 0x28d   : > { %1485 = vst.msk [vmem:[%s2441_s4 + $0xa8] sm:$0xff] %vm414_vm0, %v1453_v53 }
 0x293   : > { %v1819_v59 = vpop.f32.mrb[24].mxu0 }
 0x294   : > { %v1442_v0 = vmul.f32 %v2002_v60, %v1819_v59  ;;  %v1224_v6 = vpop.f32.mrb[25].mxu0 }
 0x295   : > { %v1440_v54 = vmul.f32 %v2004_v5, %v1224_v6  ;;  %v1820_v10 = vpop.f32.mrb[26].mxu0 }
 0x296   : > { %1474 = vst.msk [vmem:[%s2441_s4 + $0x50] sm:$0xff] %vm414_vm0, %v1442_v0  ;;  %v1443_v12 = vmul.f32 %v2006_v7, %v1820_v10  ;;  %v1227_v55 = vpop.f32.mrb[27].mxu0 }
 0x297   : > { %1472 = vst.msk [vmem:[%s2441_s4 + $0x40] sm:$0xff] %vm414_vm0, %v1440_v54  ;;  %v1441_v11 = vmul.f32 %v2008_v8, %v1227_v55  ;;  %v1851_v16 = vpop.f32.mrb[24].mxu1 }
 0x298   : > { %1475 = vst.msk [vmem:[%s2441_s4 + $0x58] sm:$0xff] %vm414_vm0, %v1443_v12  ;;  %v1458_v29 = vmul.f32 %v2010_v14, %v1851_v16  ;;  %v1369_v15 = vpop.f32.mrb[25].mxu1 }
 0x299   : > { %1473 = vst.msk [vmem:[%s2441_s4 + $0x48] sm:$0xff] %vm414_vm0, %v1441_v11  ;;  %v1456_v13 = vmul.f32 %v2012_v17, %v1369_v15  ;;  %v1852_v62 = vpop.f32.mrb[26].mxu1 }
 0x29a   : > { %1490 = vst.msk [vmem:[%s2441_s4 + $0xd0] sm:$0xff] %vm414_vm0, %v1458_v29  ;;  %v1459_v20 = vmul.f32 %v2014_v61, %v1852_v62  ;;  %v1372_v21 = vpop.f32.mrb[27].mxu1 }
 0x29b   : > { %1488 = vst.msk [vmem:[%s2441_s4 + $0xc0] sm:$0xff] %vm414_vm0, %v1456_v13  ;;  %v1457_v22 = vmul.f32 %v2016_v18, %v1372_v21 }
 0x29c   : > { %1491 = vst.msk [vmem:[%s2441_s4 + $0xd8] sm:$0xff] %vm414_vm0, %v1459_v20 }
 0x29d   : > { %1489 = vst.msk [vmem:[%s2441_s4 + $0xc8] sm:$0xff] %vm414_vm0, %v1457_v22 }
 0x29f   : > { %v1823_v36 = vpop.f32.mrb[28].mxu0 }
 0x2a0   : > { %v1446_v23 = vmul.f32 %v2018_v34, %v1823_v36  ;;  %v1240_v26 = vpop.f32.mrb[29].mxu0 }
 0x2a1   : > { %v1444_v31 = vmul.f32 %v2020_v63, %v1240_v26  ;;  %v1824_v25 = vpop.f32.mrb[30].mxu0 }
 0x2a2   : > { %1478 = vst.msk [vmem:[%s2441_s4 + $0x70] sm:$0xff] %vm414_vm0, %v1446_v23  ;;  %v1447_v41 = vmul.f32 %v2022_v24, %v1824_v25  ;;  %v1243_v2 = vpop.f32.mrb[31].mxu0 }
 0x2a3   : > { %1476 = vst.msk [vmem:[%s2441_s4 + $0x60] sm:$0xff] %vm414_vm0, %v1444_v31  ;;  %v1445_v42 = vmul.f32 %v2024_v1, %v1243_v2 }
 0x2a4   : > { %1479 = vst.msk [vmem:[%s2441_s4 + $0x78] sm:$0xff] %vm414_vm0, %v1447_v41 }
 0x2a5   : > { %1477 = vst.msk [vmem:[%s2441_s4 + $0x68] sm:$0xff] %vm414_vm0, %v1445_v42 }
 0x2a6   : > { %v1855_v30 = vpop.f32.mrb[28].mxu1 }
 0x2a7   : > { %v1462_v35 = vmul.f32 %v2026_v28, %v1855_v30  ;;  %v1385_v3 = vpop.f32.mrb[29].mxu1 }
 0x2a8   : > { %v1460_v45 = vmul.f32 %v2028_v33, %v1385_v3  ;;  %v1856_v4 = vpop.f32.mrb[30].mxu1 }
 0x2a9   : > { %1494 = vst.msk [vmem:[%s2441_s4 + $0xf0] sm:$0xff] %vm414_vm0, %v1462_v35  ;;  %v1463_v38 = vmul.f32 %v2030_v32, %v1856_v4  ;;  %v1388_v39 = vpop.f32.mrb[31].mxu1 }
 0x2aa   : > { %1492 = vst.msk [vmem:[%s2441_s4 + $0xe0] sm:$0xff] %vm414_vm0, %v1460_v45  ;;  %v1461_v37 = vmul.f32 %v2032_v48, %v1388_v39 }
 0x2ab   : > { %1495 = vst.msk [vmem:[%s2441_s4 + $0xf8] sm:$0xff] %vm414_vm0, %v1463_v38 }
 0x2ac   : > { %1493 = vst.msk [vmem:[%s2441_s4 + $0xe8] sm:$0xff] %vm414_vm0, %v1461_v37 }
 0x2ad PF: > { %s13_s14 = sadd.s32 1, %s2055_s14   ;;  %s2524_s12 = smov %s2051_s13 }
 0x2ae   : > { %p10_p5 = scmp.ge.s32.totalorder %s13_s14, 6   ;;  %s2525_s13 = smov %s2527_s15 }
 0x2b0   :  { %12 = sbr.rel (!%p10_p5) target bundleno = 2 (0x2), region = 68 }

</bundles_post_ra>
